<compile_context>
chip_gen: v5e
topology: v5e:2x2
jax: 0.10.0
libtpu: 0.0.40
codegen_flags: <defaults>
</compile_context>

<pallas_src>
import functools

import jax
import jax.numpy as jnp
from jax.experimental import pallas as pl
from jax.experimental.pallas import tpu as pltpu


def _mlp_kernel(x_ref,      # (n_in, Bt)   bf16   input tile, batch on lanes
                w0_ref,     # (H, n_in)    bf16   input layer weight (PyTorch layout)
                wh_ref,     # (3, H, H)    bf16   hidden1..hidden3 weights, packed
                b_ref,      # (4, H, 1)    f32    biases of the 4 tanh layers, packed
                wo_ref,     # (H, 1)       f32    output-head weight (column)
                bo_ref,     # (1, 1)       f32    output-head bias
                o_ref):     # (1, Bt)      f32    lane-dense output tile
    """One batch tile of the UnifiedModel forward pass, fully in VMEM."""
    b = b_ref[...]                                            # (4, H, 1) f32

    # Layer 0: (H, n_in) @ (n_in, Bt) -> (H, Bt), f32 accumulate on the MXU.
    h = jnp.dot(w0_ref[...], x_ref[...],
                preferred_element_type=jnp.float32)
    h = jnp.tanh(h + b[0])                                    # f32 VPU/EUP

    # Hidden layers 1..3 (unrolled; 3 tiny (H,H) matmuls).
    for l in range(3):
        h = jnp.dot(wh_ref[l], h.astype(jnp.bfloat16),
                    preferred_element_type=jnp.float32)
        h = jnp.tanh(h + b[l + 1])

    # Output head H -> 1: VPU multiply + sublane reduction (keeps the MXU /
    # vex slot free and produces a lane-dense (1, Bt) result directly).
    out = jnp.sum(h * wo_ref[...], axis=0, keepdims=True) + bo_ref[...]
    o_ref[...] = out.astype(o_ref.dtype)


@functools.partial(jax.jit, static_argnames=("block_b",))
def unified_model_forward(x, params, block_b=512):
    """x: (B, n_in) float32. params: PyTorch-layout weights (see init_params).

    Returns (B, 1) float32, matching UnifiedModel.forward.
    """
    B, n_in = x.shape
    H = params["w0"].shape[0]
    assert block_b % 128 == 0, "block_b must be a multiple of 128 (lane width)"

    # Pad the batch up to a multiple of block_b (padded rows are discarded).
    B_pad = max(block_b, pl.cdiv(B, block_b) * block_b)
    x_pad = jnp.pad(x, ((0, B_pad - B), (0, 0)))
    x_t = x_pad.T.astype(jnp.bfloat16)                        # (n_in, B_pad)

    # Pack / cast parameters (layout plumbing, fused by XLA outside the kernel).
    w0 = params["w0"].astype(jnp.bfloat16)                    # (H, n_in)
    wh = jnp.stack([params["w1"], params["w2"],
                    params["w3"]]).astype(jnp.bfloat16)       # (3, H, H)
    bs = jnp.stack([params["b0"], params["b1"], params["b2"],
                    params["b3"]])[:, :, None]                # (4, H, 1) f32
    wo = params["wo"][:, None].astype(jnp.float32)            # (H, 1)
    bo = jnp.reshape(params["bo"], (1, 1)).astype(jnp.float32)

    grid = (B_pad // block_b,)

    in_specs = [
        pl.BlockSpec((n_in, block_b), lambda i: (0, i)),      # x^T tile
        pl.BlockSpec((H, n_in), lambda i: (0, 0)),            # w0
        pl.BlockSpec((3, H, H), lambda i: (0, 0, 0)),         # packed hidden weights
        pl.BlockSpec((4, H, 1), lambda i: (0, 0, 0)),         # packed biases
        pl.BlockSpec((H, 1), lambda i: (0, 0)),               # head weight
        pl.BlockSpec((1, 1), lambda i: (0, 0)),               # head bias
    ]
    out_specs = pl.BlockSpec((1, block_b), lambda i: (0, i))  # lane-dense output

    out_t = pl.pallas_call(
        _mlp_kernel,
        out_shape=jax.ShapeDtypeStruct((1, B_pad), jnp.float32),
        grid_spec=pltpu.PrefetchScalarGridSpec(
            num_scalar_prefetch=0,
            grid=grid,
            in_specs=in_specs,
            out_specs=out_specs,
        ),
        compiler_params=pltpu.CompilerParams(
            dimension_semantics=("parallel",)),
    )(x_t, w0, wh, bs, wo, bo)

    # Back to the module's (B, 1) layout, dropping batch padding.
    return out_t[0, :B][:, None]


def init_params(key, n_in, H):
    """Deterministic synthetic init mirroring the PyTorch module.

    Weights are stored in PyTorch (out_features, in_features) layout.  The
    output head follows the module's explicit init: weight = ones, bias = 0.
    Other layers use U(-1/sqrt(fan_in), 1/sqrt(fan_in)) like nn.Linear.
    """
    keys = jax.random.split(key, 8)

    def linear(kw, kb, fan_in, fan_out):
        bound = 1.0 / jnp.sqrt(jnp.float32(fan_in))
        w = jax.random.uniform(kw, (fan_out, fan_in), jnp.float32, -bound, bound)
        b = jax.random.uniform(kb, (fan_out,), jnp.float32, -bound, bound)
        return w, b

    w0, b0 = linear(keys[0], keys[1], n_in, H)
    w1, b1 = linear(keys[2], keys[3], H, H)
    w2, b2 = linear(keys[4], keys[5], H, H)
    w3, b3 = linear(keys[6], keys[7], H, H)
    wo = jnp.ones((H,), jnp.float32)       # torch.nn.init.ones_(self.out.weight)
    bo = jnp.zeros((), jnp.float32)        # torch.nn.init.zeros_(self.out.bias)
    return dict(w0=w0, b0=b0, w1=w1, b1=b1, w2=w2, b2=b2, w3=w3, b3=b3,
                wo=wo, bo=bo)


def reference_forward(x, p):
    """Pure-JAX reference with the same mixed precision as the kernel
    (bf16 MXU operands, f32 accumulation / elementwise)."""
    def lin_bf16(h, w, b):
        return jnp.dot(h.astype(jnp.bfloat16), w.T.astype(jnp.bfloat16),
                       preferred_element_type=jnp.float32) + b

    h = jnp.tanh(lin_bf16(x, p["w0"], p["b0"]))
    h = jnp.tanh(lin_bf16(h, p["w1"], p["b1"]))
    h = jnp.tanh(lin_bf16(h, p["w2"], p["b2"]))
    h = jnp.tanh(lin_bf16(h, p["w3"], p["b3"]))
    return h @ p["wo"][:, None] + p["bo"]


if __name__ == "__main__":
    key = jax.random.PRNGKey(0)
    k_x, k_p = jax.random.split(key)

    # Small module shapes (n_in = H = 32); batch chosen so the padded grid has
    # two parallel steps (good for v7x's two TensorCores) and exercises the
    # batch-padding path (1000 -> 1024).
    B, n_in, H = 1000, 32, 32
    x = jax.random.normal(k_x, (B, n_in), jnp.float32)
    params = init_params(k_p, n_in, H)

    out = unified_model_forward(x, params, block_b=512)
    out = jax.block_until_ready(out)

    ref = reference_forward(x, params)
    assert out.shape == (B, 1)
    assert jnp.allclose(out, ref, atol=3e-2, rtol=3e-2), "mismatch vs reference"

    print("KERNEL_OK")
</pallas_src>

<mosaic_0001>
module attributes {stable_mosaic.version = 11 : i64} {
  func.func @_mlp_kernel(%arg0: i32, %arg1: memref<32x512xbf16, #tpu.memory_space<vmem>>, %arg2: memref<32x32xbf16, #tpu.memory_space<vmem>>, %arg3: memref<3x32x32xbf16, #tpu.memory_space<vmem>>, %arg4: memref<4x32x1xf32, #tpu.memory_space<vmem>>, %arg5: memref<32x1xf32, #tpu.memory_space<vmem>>, %arg6: memref<1x1xf32, #tpu.memory_space<vmem>>, %arg7: memref<1x512xf32, #tpu.memory_space<vmem>>) attributes {dimension_semantics = [#tpu.dimension_semantics<parallel>], iteration_bounds = array<i64: 2>, scalar_prefetch = 0 : i64, scratch_operands = 0 : i64, tpu.core_type = #tpu.core_type<tc>, window_params = [{transform_indices = @transform_0, window_bounds = array<i64: 32, 512>}, {pipeline_mode = #tpu.pipeline_mode<synchronous>, transform_indices = @transform_1, window_bounds = array<i64: 32, 32>}, {pipeline_mode = #tpu.pipeline_mode<synchronous>, transform_indices = @transform_2, window_bounds = array<i64: 3, 32, 32>}, {pipeline_mode = #tpu.pipeline_mode<synchronous>, transform_indices = @transform_3, window_bounds = array<i64: 4, 32, 1>}, {pipeline_mode = #tpu.pipeline_mode<synchronous>, transform_indices = @transform_4, window_bounds = array<i64: 32, 1>}, {pipeline_mode = #tpu.pipeline_mode<synchronous>, transform_indices = @transform_5, window_bounds = array<i64: 1, 1>}, {transform_indices = @transform_6, window_bounds = array<i64: 1, 512>}]} {
    %c0 = arith.constant 0 : index
    %c0_0 = arith.constant 0 : index
    %c0_1 = arith.constant 0 : index
    %0 = vector.load %arg4[%c0, %c0_0, %c0_1] : memref<4x32x1xf32, #tpu.memory_space<vmem>>, vector<4x32x1xf32>
    %c0_2 = arith.constant 0 : index
    %c0_3 = arith.constant 0 : index
    %1 = vector.load %arg2[%c0_2, %c0_3] : memref<32x32xbf16, #tpu.memory_space<vmem>>, vector<32x32xbf16>
    %c0_4 = arith.constant 0 : index
    %c0_5 = arith.constant 0 : index
    %2 = vector.load %arg1[%c0_4, %c0_5] : memref<32x512xbf16, #tpu.memory_space<vmem>>, vector<32x512xbf16>
    %cst = arith.constant dense<0.000000e+00> : vector<32x512xf32>
    %3 = tpu.matmul %1, %2, %cst {dimension_numbers = #tpu.dot_dimension_numbers<[1], [0], [0], [1], [0, 0, 1, 1], [], []>} : vector<32x32xbf16>, vector<32x512xbf16>, vector<32x512xf32> -> vector<32x512xf32>
    %4 = vector.extract_strided_slice %0 {offsets = [0, 0, 0], sizes = [1, 32, 1], strides = [1, 1, 1]} : vector<4x32x1xf32> to vector<1x32x1xf32>
    %5 = vector.shape_cast %4 : vector<1x32x1xf32> to vector<32x1xf32>
    %6 = vector.broadcast %5 : vector<32x1xf32> to vector<32x512xf32>
    %7 = arith.addf %3, %6 : vector<32x512xf32>
    %8 = math.tanh %7 : vector<32x512xf32>
    %c0_6 = arith.constant 0 : index
    %c0_7 = arith.constant 0 : index
    %c0_8 = arith.constant 0 : index
    %9 = vector.load %arg3[%c0_6, %c0_7, %c0_8] : memref<3x32x32xbf16, #tpu.memory_space<vmem>>, vector<1x32x32xbf16>
    %10 = vector.shape_cast %9 : vector<1x32x32xbf16> to vector<32x32xbf16>
    %11 = arith.truncf %8 : vector<32x512xf32> to vector<32x512xbf16>
    %cst_9 = arith.constant dense<0.000000e+00> : vector<32x512xf32>
    %12 = tpu.matmul %10, %11, %cst_9 {dimension_numbers = #tpu.dot_dimension_numbers<[1], [0], [0], [1], [0, 0, 1, 1], [], []>} : vector<32x32xbf16>, vector<32x512xbf16>, vector<32x512xf32> -> vector<32x512xf32>
    %13 = vector.extract_strided_slice %0 {offsets = [1, 0, 0], sizes = [1, 32, 1], strides = [1, 1, 1]} : vector<4x32x1xf32> to vector<1x32x1xf32>
    %14 = vector.shape_cast %13 : vector<1x32x1xf32> to vector<32x1xf32>
    %15 = vector.broadcast %14 : vector<32x1xf32> to vector<32x512xf32>
    %16 = arith.addf %12, %15 : vector<32x512xf32>
    %17 = math.tanh %16 : vector<32x512xf32>
    %c1 = arith.constant 1 : index
    %c0_10 = arith.constant 0 : index
    %c0_11 = arith.constant 0 : index
    %18 = vector.load %arg3[%c1, %c0_10, %c0_11] : memref<3x32x32xbf16, #tpu.memory_space<vmem>>, vector<1x32x32xbf16>
    %19 = vector.shape_cast %18 : vector<1x32x32xbf16> to vector<32x32xbf16>
    %20 = arith.truncf %17 : vector<32x512xf32> to vector<32x512xbf16>
    %cst_12 = arith.constant dense<0.000000e+00> : vector<32x512xf32>
    %21 = tpu.matmul %19, %20, %cst_12 {dimension_numbers = #tpu.dot_dimension_numbers<[1], [0], [0], [1], [0, 0, 1, 1], [], []>} : vector<32x32xbf16>, vector<32x512xbf16>, vector<32x512xf32> -> vector<32x512xf32>
    %22 = vector.extract_strided_slice %0 {offsets = [2, 0, 0], sizes = [1, 32, 1], strides = [1, 1, 1]} : vector<4x32x1xf32> to vector<1x32x1xf32>
    %23 = vector.shape_cast %22 : vector<1x32x1xf32> to vector<32x1xf32>
    %24 = vector.broadcast %23 : vector<32x1xf32> to vector<32x512xf32>
    %25 = arith.addf %21, %24 : vector<32x512xf32>
    %26 = math.tanh %25 : vector<32x512xf32>
    %c2 = arith.constant 2 : index
    %c0_13 = arith.constant 0 : index
    %c0_14 = arith.constant 0 : index
    %27 = vector.load %arg3[%c2, %c0_13, %c0_14] : memref<3x32x32xbf16, #tpu.memory_space<vmem>>, vector<1x32x32xbf16>
    %28 = vector.shape_cast %27 : vector<1x32x32xbf16> to vector<32x32xbf16>
    %29 = arith.truncf %26 : vector<32x512xf32> to vector<32x512xbf16>
    %cst_15 = arith.constant dense<0.000000e+00> : vector<32x512xf32>
    %30 = tpu.matmul %28, %29, %cst_15 {dimension_numbers = #tpu.dot_dimension_numbers<[1], [0], [0], [1], [0, 0, 1, 1], [], []>} : vector<32x32xbf16>, vector<32x512xbf16>, vector<32x512xf32> -> vector<32x512xf32>
    %31 = vector.extract_strided_slice %0 {offsets = [3, 0, 0], sizes = [1, 32, 1], strides = [1, 1, 1]} : vector<4x32x1xf32> to vector<1x32x1xf32>
    %32 = vector.shape_cast %31 : vector<1x32x1xf32> to vector<32x1xf32>
    %33 = vector.broadcast %32 : vector<32x1xf32> to vector<32x512xf32>
    %34 = arith.addf %30, %33 : vector<32x512xf32>
    %35 = math.tanh %34 : vector<32x512xf32>
    %c0_16 = arith.constant 0 : index
    %c0_17 = arith.constant 0 : index
    %36 = vector.load %arg5[%c0_16, %c0_17] : memref<32x1xf32, #tpu.memory_space<vmem>>, vector<32x1xf32>
    %37 = vector.broadcast %36 : vector<32x1xf32> to vector<32x512xf32>
    %38 = arith.mulf %35, %37 : vector<32x512xf32>
    %cst_18 = arith.constant dense<0.000000e+00> : vector<512xf32>
    %39 = vector.multi_reduction <add>, %38, %cst_18 [0] : vector<32x512xf32> to vector<512xf32>
    %40 = vector.shape_cast %39 : vector<512xf32> to vector<1x512xf32>
    %c0_19 = arith.constant 0 : index
    %c0_20 = arith.constant 0 : index
    %41 = vector.load %arg6[%c0_19, %c0_20] : memref<1x1xf32, #tpu.memory_space<vmem>>, vector<1x1xf32>
    %42 = vector.broadcast %41 : vector<1x1xf32> to vector<1x512xf32>
    %43 = arith.addf %40, %42 : vector<1x512xf32>
    %c0_21 = arith.constant 0 : index
    %c0_22 = arith.constant 0 : index
    %44 = vector.load %arg7[%c0_21, %c0_22] : memref<1x512xf32, #tpu.memory_space<vmem>>, vector<1x512xf32>
    tpu.vector_store %arg7[%c0_21, %c0_22], %43 {strides = array<i32>} : memref<1x512xf32, #tpu.memory_space<vmem>>, vector<1x512xf32>,
    return
  }
  func.func @transform_0(%arg0: i32) -> (i32, i32) {
    %c0_i32 = arith.constant 0 : i32
    %c0_i32_0 = arith.constant 0 : i32
    return %c0_i32, %arg0 : i32, i32
  }
  func.func @transform_1(%arg0: i32) -> (i32, i32) {
    %c0_i32 = arith.constant 0 : i32
    %c0_i32_0 = arith.constant 0 : i32
    %c0_i32_1 = arith.constant 0 : i32
    return %c0_i32, %c0_i32_0 : i32, i32
  }
  func.func @transform_2(%arg0: i32) -> (i32, i32, i32) {
    %c0_i32 = arith.constant 0 : i32
    %c0_i32_0 = arith.constant 0 : i32
    %c0_i32_1 = arith.constant 0 : i32
    %c0_i32_2 = arith.constant 0 : i32
    return %c0_i32, %c0_i32_0, %c0_i32_1 : i32, i32, i32
  }
  func.func @transform_3(%arg0: i32) -> (i32, i32, i32) {
    %c0_i32 = arith.constant 0 : i32
    %c0_i32_0 = arith.constant 0 : i32
    %c0_i32_1 = arith.constant 0 : i32
    %c0_i32_2 = arith.constant 0 : i32
    return %c0_i32, %c0_i32_0, %c0_i32_1 : i32, i32, i32
  }
  func.func @transform_4(%arg0: i32) -> (i32, i32) {
    %c0_i32 = arith.constant 0 : i32
    %c0_i32_0 = arith.constant 0 : i32
    %c0_i32_1 = arith.constant 0 : i32
    return %c0_i32, %c0_i32_0 : i32, i32
  }
  func.func @transform_5(%arg0: i32) -> (i32, i32) {
    %c0_i32 = arith.constant 0 : i32
    %c0_i32_0 = arith.constant 0 : i32
    %c0_i32_1 = arith.constant 0 : i32
    return %c0_i32, %c0_i32_0 : i32, i32
  }
  func.func @transform_6(%arg0: i32) -> (i32, i32) {
    %c0_i32 = arith.constant 0 : i32
    %c0_i32_0 = arith.constant 0 : i32
    return %c0_i32, %arg0 : i32, i32
  }
}

</mosaic_0001>

<bundles_post_ra>
// kernel: unified_model_forward.1
= control target key start
LH: loop header
LB: loop body
LE: loop exit
PB: predicated region body
PF: predicated region fallthrough
CT: control target
= control target key end

     0   :  { %s1602_s0 = inlined_call_operand.vmem [shape: bf16[32,1024], index: 0, kind: input, shape index: {}]   ;;  %s1603_s1 = inlined_call_operand.vmem [shape: bf16[32,32], index: 1, kind: input, shape index: {}]   ;;  %s1604_s2 = inlined_call_operand.vmem [shape: bf16[3,32,32], index: 2, kind: input, shape index: {}]   ;;  %s1605_s3 = inlined_call_operand.vmem [shape: f32[4,32,1], index: 3, kind: input, shape index: {}]   ;;  %s1606_s4 = inlined_call_operand.vmem [shape: f32[32,1], index: 4, kind: input, shape index: {}]   ;;  %s1607_s5 = inlined_call_operand.<no memory space> [shape: f32[1,1], index: 5, kind: input, shape index: {}]   ;;  %s1608_s6 = inlined_call_operand.vmem [shape: f32[1,1024], index: 6, kind: output, shape index: {}]  }
   0x1   :  { %v11_v0 = vstv %s1607_s5 }
   0x2   :  { %12 = vst [vmem:[#allocation2] sm:$0x1] %v11_v0 }
   0x3   :  { %s1422_s23 = smov 0   ;;  %s1424_s24 = smov 0  }
   0x4   :  { %s1426_s25 = smov 0  }
   0x5 LB: > { %s1070_s5 = sadd.s32 4294967295, %s1381_s25   ;;  %s1439_s26 = sadd.s32 1, %s1381_s25   ;;  %s1381_s25 = sphi %s1426_s25, %s1611_s25   ;;  %s1377_s24 = sphi %s1424_s24, %s1610_s24   ;;  %s1373_s23 = sphi %s1422_s23, %s1609_s23  }
   0x6   : > { %s22_s27 = ssub.s32 %s1381_s25, %s1439_s26  ;;  %s25_s28 = sadd.s32 1, %s1377_s24 }
   0x7   : > { %p23_p0 = scmp.eq.s32.totalorder %s22_s27, 0  ;;  %p32_p1 = scmp.ne.s32.totalorder %s1377_s24, %s1373_s23 }
   0x8   : > { %p33_p2 = scmp.eq.s32.totalorder %s1381_s25, 0  ;;  %p1073_p4 = scmp.ge.s32.totalorder %s1381_s25, 2 }
   0x9   : > { %s1448_s29 = scalar_select %p23_p0, %s1377_s24, %s25_s28  }
   0xa   : > { %p34_p3 = por %p33_p2, %p32_p1  ;;  %204 = sbr.rel (%p1073_p4) target bundleno = 27 (0x1b), region = 36 }
   0xf   : > { %207 = sbr.rel (!%p34_p3) target bundleno = 27 (0x1b), region = 40  ;;  %s209_s30 = sand.u32 (%p34_p3), 1, %s1377_s24  }
  0x10   : > { %s1186_s7 = sshll.u32 (%p34_p3), %s1381_s25, 4  ;;  %s1074_s8 = sshll.u32 (%p34_p3), %s209_s30, 6 }
  0x11   : > { %s214_s11 = scalar_lea.vmem (%p34_p3), %s1602_s0, %s1186_s7  ;;  %s211_s12 = scalar_lea.vmem (%p34_p3), [#allocation3], %s1074_s8 }
  0x12   : > { %v227_v1 = vld [vmem:[%s214_s11] sm:$0xff] (%p34_p3)  ;;  %v229_v2 = vld [vmem:[%s214_s11 + $0x8] sm:$0xff] (%p34_p3) }
  0x13   : > { %v231_v3 = vld [vmem:[%s214_s11 + $0x20] sm:$0xff] (%p34_p3)  ;;  %228 = vst [vmem:[%s211_s12] sm:$0xff] (%p34_p3), %v227_v1  ;;  %v233_v4 = vld [vmem:[%s214_s11 + $0x28] sm:$0xff] (%p34_p3) }
  0x14   : > { %230 = vst [vmem:[%s211_s12 + $0x8] sm:$0xff] %v229_v2  ;;  %v235_v5 = vld [vmem:[%s214_s11 + $0x40] sm:$0xff]  ;;  %v237_v6 = vld [vmem:[%s214_s11 + $0x48] sm:$0xff] }
  0x15   : > { %232 = vst [vmem:[%s211_s12 + $0x10] sm:$0xff] %v231_v3  ;;  %v239_v7 = vld [vmem:[%s214_s11 + $0x60] sm:$0xff]  ;;  %v241_v8 = vld [vmem:[%s214_s11 + $0x68] sm:$0xff] }
  0x16   : > { %234 = vst [vmem:[%s211_s12 + $0x18] sm:$0xff] %v233_v4 }
  0x17   : > { %236 = vst [vmem:[%s211_s12 + $0x20] sm:$0xff] %v235_v5 }
  0x18   : > { %238 = vst [vmem:[%s211_s12 + $0x28] sm:$0xff] %v237_v6 }
  0x19   : > { %240 = vst [vmem:[%s211_s12 + $0x30] sm:$0xff] %v239_v7 }
  0x1a   : > { %242 = vst [vmem:[%s211_s12 + $0x38] sm:$0xff] %v241_v8 }
  0x1b PF: > { %p1077_p5 = scmp.ge.s32.totalorder %s1381_s25, 1  ;;  %p247_p6 = scmp.lt.s32.totalorder %s1381_s25, 3 }
  0x1d   : > { %p248_p7 = pnand %p1077_p5, %p247_p6 }
  0x1e   : > { %s254_s17 = sand.u32 (!%p248_p7), 1, %s1373_s23   ;;  %s1079_s12 = sshll.u32 (!%p248_p7), %s1070_s5, 2 }
  0x1f   : > { %251 = sbr.rel (%p248_p7) target bundleno = 760 (0x2f8), region = 63  ;;  %s1078_s18 = sshll.u32 (!%p248_p7), %s254_s17, 6 }
  0x20   : > { %s256_s19 = scalar_lea.vmem (!%p248_p7), [#allocation3], %s1078_s18  ;;  %p284_p8 = scmp.lt.s32.totalorder (!%p248_p7), %s1079_s12, 7 }
  0x24   : > { %v291_v9 = vld [vmem:[%s1605_s3 + $0x10] sm:$0xff]  ;;  %v289_v10 = vld [vmem:[%s1605_s3] sm:$0xff]  ;;  %v1383_v11 = vmov 0   ;;  %v1114_v17 = vld [vmem:[%s256_s19 + $0x28] sm:$0xf]  ;;  %vm387_vm0 = vcmask 261120  }
  0x25   : > { %1229 = vset.pattern.permute.xlu1 %v1383_v11  ;;  %1228 = vset.pattern.permute.xlu0 %v1383_v11  ;;  %v1106_v12 = vld [vmem:[%s256_s19 + $0x20] sm:$0xf]  ;;  %v1195_v13 = vld [vmem:[%s256_s19 + $0x2c] sm:$0xf0]  ;;  %v1193_v14 = vld [vmem:[%s256_s19 + $0x24] sm:$0xf] }
  0x26   : > { %329 = vperm.xlu0 %1228, %v291_v9   ;;  %319 = vperm.xlu1 %1229, %v289_v10   ;;  %v1107_v15 = vor.u32 %v1195_v13, %v1106_v12  ;;  %v1108_v16 = vld [vmem:[%s256_s19 + $0x30] sm:$0xf0]  ;;  %v1196_v18 = vld [vmem:[%s256_s19 + $0x34] sm:$0xf0]  ;;  %v1194_v21 = vld [vmem:[%s256_s19 + $0x2c] sm:$0xf] }
  0x27   : > { %1230 = vset.pattern.permute.xlu2 %v1383_v11  ;;  %v1111_v19 = vor.u32 %v1193_v14, %v1108_v16  ;;  %v1115_v20 = vor.u32 %v1196_v18, %v1114_v17  ;;  %v1116_v22 = vld [vmem:[%s256_s19 + $0x38] sm:$0xf0]  ;;  %v290_v24 = vld [vmem:[%s1605_s3 + $0x8] sm:$0xff]  ;;  %v1090_v25 = vld [vmem:[%s256_s19] sm:$0xf]  ;;  %s1613_s12 = smov (!%p284_p8, %s1079_s12), 7 }
  0x28   : > { %v292_v23 = vld [vmem:[%s1605_s3 + $0x18] sm:$0xff]  ;;  %400 = vmatpush.bf16.msra.mxu0 %v1107_v15  ;;  %v1119_v26 = vor.u32 %v1194_v21, %v1116_v22  ;;  %v1191_v27 = vld [vmem:[%s256_s19 + $0xc] sm:$0xf0]  ;;  %v1189_v28 = vld [vmem:[%s256_s19 + $0x4] sm:$0xf]  ;;  %vm1002_vm1 = vcmask 1040384   ;;  %s286_s13 = scalar_lea.vmem %s1608_s6, %s1613_s12 }
  0x29   : > { %v1092_v29 = vld [vmem:[%s256_s19 + $0x10] sm:$0xf0]  ;;  %419 = vmatpush.bf16.msra.mxu1 %v1111_v19  ;;  %438 = vmatpush.bf16.msra.mxu2 %v1115_v20  ;;  %v1091_v30 = vor.u32 %v1191_v27, %v1090_v25  ;;  %v1098_v32 = vld [vmem:[%s256_s19 + $0x8] sm:$0xf]  ;;  %v1192_v33 = vld [vmem:[%s256_s19 + $0x14] sm:$0xf0] }
  0x2a   : > { %v1095_v31 = vor.u32 %v1189_v28, %v1092_v29  ;;  %v1190_v34 = vld [vmem:[%s256_s19 + $0xc] sm:$0xf]  ;;  %457 = vmatpush.bf16.msra.mxu3 %v1119_v26  ;;  %v1099_v35 = vor.u32 %v1192_v33, %v1098_v32  ;;  %v1100_v36 = vld [vmem:[%s256_s19 + $0x18] sm:$0xf0]  ;;  %vm1004_vm2 = vcmask 1042434   ;;  %vm1006_vm3 = vcmask 1041408  }
  0x2b   : > { %v1103_v37 = vor.u32 %v1190_v34, %v1100_v36  ;;  %v1187_v38 = vld [vmem:[%s1603_s1] sm:$0xff]  ;;  %v294_v40 = vld [vmem:[%s1605_s3 + $0x28] sm:$0xff]  ;;  %v300_v41 = vld [vmem:[%s1605_s3 + $0x58] sm:$0xff] }
  0x2c   : > { %401 = vmatpush.bf16.msra.mxu0 %v1091_v30  ;;  %v293_v39 = vld [vmem:[%s1605_s3 + $0x20] sm:$0xff]  ;;  %v1188_v43 = vld [vmem:[%s1603_s1 + $0x8] sm:$0xff]  ;;  %v304_v46 = vld [vmem:[%s1605_s3 + $0x78] sm:$0xff] }
  0x2d   : > { %420 = vmatpush.bf16.msra.mxu1 %v1095_v31  ;;  %439 = vmatpush.bf16.msra.mxu2 %v1099_v35  ;;  %v297_v42 = vld [vmem:[%s1605_s3 + $0x40] sm:$0xff]  ;;  %v302_v45 = vld [vmem:[%s1605_s3 + $0x68] sm:$0xff]  ;;  %v910_v48 = vld [vmem:[%s1606_s4 + $0x10] sm:$0xff] }
  0x2e   : > { %334 = vperm.xlu0 %1228, %v292_v23   ;;  %324 = vperm.xlu1 %1229, %v290_v24   ;;  %v301_v44 = vld [vmem:[%s1605_s3 + $0x60] sm:$0xff]  ;;  %v911_v49 = vld [vmem:[%s1606_s4 + $0x18] sm:$0xff]  ;;  %v295_v62 = vld [vmem:[%s1605_s3 + $0x30] sm:$0xff] }
  0x2f   : > { %458 = vmatpush.bf16.msra.mxu3 %v1103_v37  ;;  %1120 = vmatmul.msk.bf16.vlgmr.msra.gmra.mxu0 %vm387_vm0, %v1187_v38  ;;  %v908_v47 = vld [vmem:[%s1606_s4] sm:$0xff]  ;;  %v296_v30 = vld [vmem:[%s1605_s3 + $0x38] sm:$0xff] }
  0x30   : > { %1122 = vmatmul.msk.bf16.vlgmr.msra.gmra.mxu1 %vm387_vm0, %v1187_v38  ;;  %1124 = vmatmul.msk.bf16.vlgmr.msra.gmra.mxu2 %vm387_vm0, %v1187_v38 }
  0x31   : > { %510 = vperm.xlu2 %1230, %v295_v62  }
  0x32   : > { %1126 = vmatmul.msk.bf16.vlgmr.msra.gmra.mxu3 %vm387_vm0, %v1187_v38 }
  0x36   : > { %500 = vperm.xlu0 %1228, %v293_v39   ;;  %505 = vperm.xlu1 %1229, %v294_v40   ;;  %v1197_v39 = vld [vmem:[%s1604_s2] sm:$0xff] }
  0x39   : > { %515 = vperm.xlu2 %1230, %v296_v30  }
  0x3e   : > { %656 = vperm.xlu0 %1228, %v300_v41   ;;  %641 = vperm.xlu1 %1229, %v297_v42  }
  0x3f   : > { %1121 = vmatmul.msk.bf16.gmra.mxu0 %vm387_vm0, %v1188_v43 }
  0x40   : > { %1123 = vmatmul.msk.bf16.gmra.mxu1 %vm387_vm0, %v1188_v43  ;;  %1125 = vmatmul.msk.bf16.gmra.mxu2 %vm387_vm0, %v1188_v43 }
  0x42   : > { %1127 = vmatmul.msk.bf16.gmra.mxu3 %vm387_vm0, %v1188_v43 }
  0x46   : > { %782 = vperm.xlu0 %1228, %v301_v44   ;;  %787 = vperm.xlu1 %1229, %v302_v45   ;;  %v299_v44 = vld [vmem:[%s1605_s3 + $0x50] sm:$0xff] }
  0x47   : > { %651 = vperm.xlu2 %1230, %v299_v44  }
  0x4e   : > { %797 = vperm.xlu0 %1228, %v304_v46   ;;  %914 = vperm.xlu1 %1229, %v908_v47  }
  0x56   : > { %924 = vperm.xlu0 %1228, %v910_v48   ;;  %929 = vperm.xlu1 %1229, %v911_v49  }
  0x98   : > { %v330_v56 = vpop.permute.xlu0 %329  ;;  %v320_v57 = vpop.permute.xlu1 %319 }
  0xa0   : > { %v335_v1 = vpop.permute.xlu0 %334  ;;  %v325_v8 = vpop.permute.xlu1 %324 }
  0xac   : > { %v403_v50 = vpop.f32.mrf.mxu0 }
  0xad   : > { %v422_v51 = vpop.f32.mrf.mxu1  ;;  %v404_v63 = vadd.f32 %v403_v50, %v320_v57  ;;  %v298_v50 = vld [vmem:[%s1605_s3 + $0x48] sm:$0xff] }
  0xae   : > { %v423_v0 = vadd.f32 %v422_v51, %v320_v57  ;;  %646 = vperm.xlu2 %1230, %v298_v50   ;;  %v1198_v51 = vld [vmem:[%s1604_s2 + $0x8] sm:$0xff] }
  0xaf   : > { %1231 = vtanh.f32 %v404_v63 }
  0xb0   : > { %1233 = vtanh.f32 %v423_v0 }
  0xb3   : > { %v441_v52 = vpop.f32.mrf.mxu2 }
  0xb4   : > { %v405_v54 = vpop.f32.mrf.mxu0  ;;  %v442_v26 = vadd.f32 %v441_v52, %v320_v57  ;;  %v303_v52 = vld [vmem:[%s1605_s3 + $0x70] sm:$0xff] }
  0xb5   : > { %v460_v53 = vpop.f32.mrf.mxu3  ;;  %v424_v55 = vpop.f32.mrf.mxu1  ;;  %v406_v11 = vadd.f32 %v405_v54, %v325_v8  ;;  %v984_v54 = vld [vmem:[#allocation2] sm:$0x1] }
  0xb6   : > { %v425_v12 = vadd.f32 %v424_v55, %v325_v8  ;;  %v1232_v15 = vpop.eup %1231  ;;  %v461_v28 = vadd.f32 %v460_v53, %v320_v57  ;;  %792 = vperm.xlu2 %1230, %v303_v52   ;;  %v909_v53 = vld [vmem:[%s1606_s4 + $0x8] sm:$0xff]  ;;  %v1200_v52 = vld [vmem:[%s1604_s2 + $0x18] sm:$0xff] }
  0xb7   : > { %v1234_v16 = vpop.eup %1233 }
  0xbb   : > { %v443_v58 = vpop.f32.mrf.mxu2 }
  0xbc   : > { %v408_v60 = vpop.f32.mrf.mxu0  ;;  %v444_v20 = vadd.f32 %v443_v58, %v325_v8 }
  0xbd   : > { %v462_v59 = vpop.f32.mrf.mxu3  ;;  %v427_v61 = vpop.f32.mrf.mxu1  ;;  %v409_v2 = vadd.f32 %v408_v60, %v330_v56 }
  0xbe   : > { %v428_v3 = vadd.f32 %v427_v61, %v330_v56  ;;  %v463_v24 = vadd.f32 %v462_v59, %v325_v8  ;;  %919 = vperm.xlu2 %1230, %v909_v53   ;;  %v511_v61 = vpop.permute.xlu2 %510 }
  0xbf   : > { %1235 = vtanh.f32 %v409_v2 }
  0xc0   : > { %1237 = vtanh.f32 %v428_v3 }
  0xc3   : > { %v446_v4 = vpop.f32.mrf.mxu2 }
  0xc4   : > { %v410_v6 = vpop.f32.mrf.mxu0  ;;  %v447_v13 = vadd.f32 %v446_v4, %v330_v56  ;;  %v506_v4 = vpop.permute.xlu1 %505 }
  0xc5   : > { %v465_v5 = vpop.f32.mrf.mxu3  ;;  %v429_v7 = vpop.f32.mrf.mxu1  ;;  %v411_v9 = vadd.f32 %v410_v6, %v335_v1 }
  0xc6   : > { %v430_v10 = vadd.f32 %v429_v7, %v335_v1  ;;  %v466_v14 = vadd.f32 %v465_v5, %v330_v56  ;;  %v1236_v19 = vpop.eup %1235  ;;  %987 = vperm.xlu2 %1230, %v984_v54   ;;  %v516_v5 = vpop.permute.xlu2 %515 }
  0xc7   : > { %1239 = vtanh.f32 %v411_v9  ;;  %v1238_v23 = vpop.eup %1237 }
  0xc8   : > { %1241 = vtanh.f32 %v430_v10  ;;  %v501_v10 = vpop.permute.xlu0 %500 }
  0xc9   : > { %1243 = vtanh.f32 %v406_v11 }
  0xca   : > { %1245 = vtanh.f32 %v425_v12 }
  0xcb   : > { %v448_v17 = vpop.f32.mrf.mxu2  ;;  %1247 = vtanh.f32 %v447_v13 }
  0xcc   : > { %v449_v21 = vadd.f32 %v448_v17, %v335_v1  ;;  %1249 = vtanh.f32 %v466_v14 }
  0xcd   : > { %v467_v18 = vpop.f32.mrf.mxu3  ;;  %v1240_v25 = vpop.eup %1239 }
  0xce   : > { %v468_v22 = vadd.f32 %v467_v18, %v335_v1  ;;  %1251 = vtanh.f32 %v449_v21  ;;  %v1242_v27 = vpop.eup %1241  ;;  %v494_v29 = vpack.c.bf16 %v1240_v25, %v1236_v19 }
  0xcf   : > { %v1244_v31 = vpop.eup %1243  ;;  %v495_v32 = vpack.c.bf16 %v1242_v27, %v1238_v23 }
  0xd0   : > { %1253 = vtanh.f32 %v468_v22  ;;  %v1246_v33 = vpop.eup %1245  ;;  %540 = vmatpush.bf16.msrb.mxu0 %v494_v29  ;;  %v490_v36 = vpack.c.bf16 %v1244_v31, %v1232_v15 }
  0xd1   : > { %1255 = vtanh.f32 %v444_v20  ;;  %v1248_v34 = vpop.eup %1247  ;;  %559 = vmatpush.bf16.msrb.mxu1 %v495_v32  ;;  %v491_v38 = vpack.c.bf16 %v1246_v33, %v1234_v16 }
  0xd2   : > { %1257 = vtanh.f32 %v463_v24  ;;  %v1250_v35 = vpop.eup %1249 }
  0xd3   : > { %1259 = vtanh.f32 %v442_v26 }
  0xd4   : > { %1261 = vtanh.f32 %v461_v28  ;;  %v1252_v37 = vpop.eup %1251  ;;  %541 = vmatpush.bf16.msrb.mxu0 %v490_v36 }
  0xd5   : > { %v496_v41 = vpack.c.bf16 %v1252_v37, %v1248_v34  ;;  %560 = vmatpush.bf16.msrb.mxu1 %v491_v38  ;;  %v1199_v38 = vld [vmem:[%s1604_s2 + $0x10] sm:$0xff] }
  0xd6   : > { %v1254_v40 = vpop.eup %1253 }
  0xd7   : > { %v1256_v42 = vpop.eup %1255  ;;  %v497_v43 = vpack.c.bf16 %v1254_v40, %v1250_v35  ;;  %578 = vmatpush.bf16.msrb.mxu2 %v496_v41  ;;  %1136 = vmatmul.msk.bf16.vlgmr.msrb.gmra.mxu0 %vm387_vm0, %v1197_v39 }
  0xd8   : > { %v1258_v45 = vpop.eup %1257  ;;  %1138 = vmatmul.msk.bf16.vlgmr.msrb.gmra.mxu1 %vm387_vm0, %v1197_v39 }
  0xd9   : > { %v1260_v46 = vpop.eup %1259  ;;  %597 = vmatpush.bf16.msrb.mxu3 %v497_v43 }
  0xda   : > { %v1262_v47 = vpop.eup %1261  ;;  %v492_v48 = vpack.c.bf16 %v1256_v42, %v1260_v46 }
  0xdb   : > { %v493_v49 = vpack.c.bf16 %v1258_v45, %v1262_v47 }
  0xdc   : > { %579 = vmatpush.bf16.msrb.mxu2 %v492_v48 }
  0xdd   : > { %598 = vmatpush.bf16.msrb.mxu3 %v493_v49 }
  0xdf   : > { %1140 = vmatmul.msk.bf16.vlgmr.msrb.gmra.mxu2 %vm387_vm0, %v1197_v39 }
  0xe0   : > { %1142 = vmatmul.msk.bf16.vlgmr.msrb.gmra.mxu3 %vm387_vm0, %v1197_v39 }
  0xe7   : > { %1137 = vmatmul.msk.bf16.gmra.mxu0 %vm387_vm0, %v1198_v51 }
  0xe8   : > { %1139 = vmatmul.msk.bf16.gmra.mxu1 %vm387_vm0, %v1198_v51 }
  0xef   : > { %1141 = vmatmul.msk.bf16.gmra.mxu2 %vm387_vm0, %v1198_v51 }
  0xf0   : > { %1143 = vmatmul.msk.bf16.gmra.mxu3 %vm387_vm0, %v1198_v51 }
 0x154   : > { %v543_v55 = vpop.f32.mrf.mxu0 }
 0x155   : > { %v562_v56 = vpop.f32.mrf.mxu1  ;;  %v544_v13 = vadd.f32 %v543_v55, %v501_v10 }
 0x156   : > { %v563_v14 = vadd.f32 %v562_v56, %v501_v10 }
 0x15c   : > { %v545_v57 = vpop.f32.mrf.mxu0 }
 0x15d   : > { %v564_v58 = vpop.f32.mrf.mxu1  ;;  %v546_v7 = vadd.f32 %v545_v57, %v506_v4  ;;  %v652_v57 = vpop.permute.xlu2 %651 }
 0x15e   : > { %v565_v11 = vadd.f32 %v564_v58, %v506_v4 }
 0x162   : > { %v581_v59 = vpop.f32.mrf.mxu2 }
 0x163   : > { %v600_v60 = vpop.f32.mrf.mxu3  ;;  %v582_v36 = vadd.f32 %v581_v59, %v501_v10 }
 0x164   : > { %v548_v62 = vpop.f32.mrf.mxu0  ;;  %v601_v39 = vadd.f32 %v600_v60, %v501_v10 }
 0x165   : > { %v567_v63 = vpop.f32.mrf.mxu1  ;;  %v549_v1 = vadd.f32 %v548_v62, %v511_v61 }
 0x166   : > { %v568_v3 = vadd.f32 %v567_v63, %v511_v61 }
 0x167   : > { %1263 = vtanh.f32 %v549_v1  ;;  %v647_v1 = vpop.permute.xlu2 %646 }
 0x168   : > { %1265 = vtanh.f32 %v568_v3 }
 0x16a   : > { %v583_v0 = vpop.f32.mrf.mxu2 }
 0x16b   : > { %v602_v2 = vpop.f32.mrf.mxu3  ;;  %v584_v29 = vadd.f32 %v583_v0, %v506_v4  ;;  %v657_v0 = vpop.permute.xlu0 %656 }
 0x16c   : > { %v550_v6 = vpop.f32.mrf.mxu0  ;;  %v603_v33 = vadd.f32 %v602_v2, %v506_v4 }
 0x16d   : > { %v551_v8 = vadd.f32 %v550_v6, %v516_v5  ;;  %v569_v9 = vpop.f32.mrf.mxu1  ;;  %v1264_v17 = vpop.eup %1263 }
 0x16e   : > { %v570_v12 = vadd.f32 %v569_v9, %v516_v5  ;;  %v1266_v18 = vpop.eup %1265  ;;  %v642_v6 = vpop.permute.xlu1 %641 }
 0x16f   : > { %1267 = vtanh.f32 %v551_v8 }
 0x170   : > { %1269 = vtanh.f32 %v570_v12 }
 0x171   : > { %1271 = vtanh.f32 %v546_v7 }
 0x172   : > { %v586_v15 = vpop.f32.mrf.mxu2  ;;  %1273 = vtanh.f32 %v565_v11 }
 0x173   : > { %v605_v16 = vpop.f32.mrf.mxu3  ;;  %1275 = vtanh.f32 %v544_v13  ;;  %v587_v20 = vadd.f32 %v586_v15, %v511_v61 }
 0x174   : > { %1277 = vtanh.f32 %v563_v14  ;;  %v606_v22 = vadd.f32 %v605_v16, %v511_v61 }
 0x175   : > { %v1268_v19 = vpop.eup %1267  ;;  %1279 = vtanh.f32 %v587_v20 }
 0x176   : > { %v1270_v21 = vpop.eup %1269  ;;  %v635_v23 = vpack.c.bf16 %v1268_v19, %v1264_v17  ;;  %1281 = vtanh.f32 %v606_v22 }
 0x177   : > { %v1272_v24 = vpop.eup %1271  ;;  %v636_v25 = vpack.c.bf16 %v1270_v21, %v1266_v18 }
 0x178   : > { %v1274_v26 = vpop.eup %1273  ;;  %681 = vmatpush.bf16.msra.mxu0 %v635_v23 }
 0x179   : > { %v1276_v28 = vpop.eup %1275  ;;  %700 = vmatpush.bf16.msra.mxu1 %v636_v25 }
 0x17a   : > { %v588_v27 = vpop.f32.mrf.mxu2  ;;  %v1278_v32 = vpop.eup %1277  ;;  %v631_v35 = vpack.c.bf16 %v1272_v24, %v1276_v28  ;;  %v1201_v28 = vld [vmem:[%s1604_s2 + $0x20] sm:$0xff] }
 0x17b   : > { %v589_v30 = vadd.f32 %v588_v27, %v516_v5  ;;  %v607_v31 = vpop.f32.mrf.mxu3  ;;  %v632_v37 = vpack.c.bf16 %v1274_v26, %v1278_v32  ;;  %v1280_v40 = vpop.eup %1279 }
 0x17c   : > { %v608_v34 = vadd.f32 %v607_v31, %v516_v5  ;;  %682 = vmatpush.bf16.msra.mxu0 %v631_v35  ;;  %v1282_v41 = vpop.eup %1281 }
 0x17d   : > { %1283 = vtanh.f32 %v589_v30  ;;  %701 = vmatpush.bf16.msra.mxu1 %v632_v37 }
 0x17e   : > { %1285 = vtanh.f32 %v608_v34 }
 0x17f   : > { %1287 = vtanh.f32 %v584_v29  ;;  %1156 = vmatmul.msk.bf16.vlgmr.msra.gmra.mxu0 %vm387_vm0, %v1199_v38 }
 0x180   : > { %1289 = vtanh.f32 %v603_v33  ;;  %1158 = vmatmul.msk.bf16.vlgmr.msra.gmra.mxu1 %vm387_vm0, %v1199_v38 }
 0x181   : > { %1291 = vtanh.f32 %v582_v36 }
 0x182   : > { %1293 = vtanh.f32 %v601_v39 }
 0x183   : > { %v1284_v42 = vpop.eup %1283 }
 0x184   : > { %v1286_v43 = vpop.eup %1285  ;;  %v637_v44 = vpack.c.bf16 %v1284_v42, %v1280_v40 }
 0x185   : > { %v1288_v45 = vpop.eup %1287  ;;  %v638_v46 = vpack.c.bf16 %v1286_v43, %v1282_v41 }
 0x186   : > { %v1290_v47 = vpop.eup %1289  ;;  %719 = vmatpush.bf16.msra.mxu2 %v637_v44 }
 0x187   : > { %v1292_v48 = vpop.eup %1291  ;;  %738 = vmatpush.bf16.msra.mxu3 %v638_v46 }
 0x188   : > { %v1294_v49 = vpop.eup %1293  ;;  %v633_v50 = vpack.c.bf16 %v1288_v45, %v1292_v48 }
 0x189   : > { %v634_v51 = vpack.c.bf16 %v1290_v47, %v1294_v49  ;;  %v1202_v47 = vld [vmem:[%s1604_s2 + $0x28] sm:$0xff] }
 0x18a   : > { %720 = vmatpush.bf16.msra.mxu2 %v633_v50 }
 0x18b   : > { %739 = vmatpush.bf16.msra.mxu3 %v634_v51 }
 0x18d   : > { %1160 = vmatmul.msk.bf16.vlgmr.msra.gmra.mxu2 %vm387_vm0, %v1199_v38 }
 0x18e   : > { %1162 = vmatmul.msk.bf16.vlgmr.msra.gmra.mxu3 %vm387_vm0, %v1199_v38 }
 0x18f   : > { %1157 = vmatmul.msk.bf16.gmra.mxu0 %vm387_vm0, %v1200_v52 }
 0x190   : > { %1159 = vmatmul.msk.bf16.gmra.mxu1 %vm387_vm0, %v1200_v52 }
 0x19d   : > { %1161 = vmatmul.msk.bf16.gmra.mxu2 %vm387_vm0, %v1200_v52 }
 0x19e   : > { %1163 = vmatmul.msk.bf16.gmra.mxu3 %vm387_vm0, %v1200_v52 }
 0x1fc   : > { %v684_v53 = vpop.f32.mrf.mxu0 }
 0x1fd   : > { %v703_v54 = vpop.f32.mrf.mxu1  ;;  %v685_v10 = vadd.f32 %v684_v53, %v642_v6 }
 0x1fe   : > { %v704_v12 = vadd.f32 %v703_v54, %v642_v6 }
 0x204   : > { %v686_v55 = vpop.f32.mrf.mxu0 }
 0x205   : > { %v705_v56 = vpop.f32.mrf.mxu1  ;;  %v687_v3 = vadd.f32 %v686_v55, %v647_v1  ;;  %v783_v55 = vpop.permute.xlu0 %782 }
 0x206   : > { %v706_v7 = vadd.f32 %v705_v56, %v647_v1 }
 0x20c   : > { %v689_v58 = vpop.f32.mrf.mxu0 }
 0x20d   : > { %v708_v59 = vpop.f32.mrf.mxu1  ;;  %v690_v62 = vadd.f32 %v689_v58, %v652_v57 }
 0x20e   : > { %v709_v63 = vadd.f32 %v708_v59, %v652_v57 }
 0x20f   : > { %1295 = vtanh.f32 %v690_v62  ;;  %v1575_v62 = vpop.permute.xlu0 %797 }
 0x210   : > { %v722_v60 = vpop.f32.mrf.mxu2  ;;  %1297 = vtanh.f32 %v709_v63 }
 0x211   : > { %v741_v61 = vpop.f32.mrf.mxu3  ;;  %v723_v36 = vadd.f32 %v722_v60, %v642_v6  ;;  %v793_v60 = vpop.permute.xlu2 %792 }
 0x212   : > { %v742_v37 = vadd.f32 %v741_v61, %v642_v6 }
 0x214   : > { %v691_v2 = vpop.f32.mrf.mxu0 }
 0x215   : > { %v692_v4 = vadd.f32 %v691_v2, %v657_v0  ;;  %v710_v5 = vpop.f32.mrf.mxu1  ;;  %v1296_v13 = vpop.eup %1295 }
 0x216   : > { %v711_v8 = vadd.f32 %v710_v5, %v657_v0  ;;  %v1298_v14 = vpop.eup %1297 }
 0x217   : > { %1299 = vtanh.f32 %v692_v4 }
 0x218   : > { %v724_v9 = vpop.f32.mrf.mxu2  ;;  %1301 = vtanh.f32 %v711_v8 }
 0x219   : > { %v743_v11 = vpop.f32.mrf.mxu3  ;;  %1303 = vtanh.f32 %v687_v3  ;;  %v725_v31 = vadd.f32 %v724_v9, %v647_v1 }
 0x21a   : > { %1305 = vtanh.f32 %v706_v7  ;;  %v744_v34 = vadd.f32 %v743_v11, %v647_v1 }
 0x21b   : > { %1307 = vtanh.f32 %v685_v10 }
 0x21c   : > { %1309 = vtanh.f32 %v704_v12 }
 0x21d   : > { %v1300_v15 = vpop.eup %1299 }
 0x21e   : > { %v1302_v16 = vpop.eup %1301  ;;  %v776_v18 = vpack.c.bf16 %v1300_v15, %v1296_v13  ;;  %v920_v15 = vpop.permute.xlu2 %919 }
 0x21f   : > { %v1304_v19 = vpop.eup %1303  ;;  %v777_v21 = vpack.c.bf16 %v1302_v16, %v1298_v14 }
 0x220   : > { %v727_v17 = vpop.f32.mrf.mxu2  ;;  %v1306_v22 = vpop.eup %1305  ;;  %822 = vmatpush.bf16.msrb.mxu0 %v776_v18 }
 0x221   : > { %v746_v20 = vpop.f32.mrf.mxu3  ;;  %v1308_v23 = vpop.eup %1307  ;;  %841 = vmatpush.bf16.msrb.mxu1 %v777_v21  ;;  %v728_v26 = vadd.f32 %v727_v17, %v652_v57 }
 0x222   : > { %v1310_v24 = vpop.eup %1309  ;;  %v772_v25 = vpack.c.bf16 %v1304_v19, %v1308_v23  ;;  %v747_v29 = vadd.f32 %v746_v20, %v652_v57  ;;  %v788_v57 = vpop.permute.xlu1 %787 }
 0x223   : > { %v773_v27 = vpack.c.bf16 %v1306_v22, %v1310_v24  ;;  %1311 = vtanh.f32 %v728_v26  ;;  %v925_v18 = vpop.permute.xlu0 %924 }
 0x224   : > { %823 = vmatpush.bf16.msrb.mxu0 %v772_v25  ;;  %1313 = vtanh.f32 %v747_v29 }
 0x225   : > { %842 = vmatpush.bf16.msrb.mxu1 %v773_v27 }
 0x227   : > { %1176 = vmatmul.msk.bf16.vlgmr.msrb.gmra.mxu0 %vm387_vm0, %v1201_v28 }
 0x228   : > { %v729_v30 = vpop.f32.mrf.mxu2  ;;  %1178 = vmatmul.msk.bf16.vlgmr.msrb.gmra.mxu1 %vm387_vm0, %v1201_v28 }
 0x229   : > { %v730_v32 = vadd.f32 %v729_v30, %v657_v0  ;;  %v748_v33 = vpop.f32.mrf.mxu3  ;;  %v1312_v38 = vpop.eup %1311 }
 0x22a   : > { %v749_v35 = vadd.f32 %v748_v33, %v657_v0  ;;  %v1314_v39 = vpop.eup %1313  ;;  %v1578_v4 = vpop.permute.xlu1 %914 }
 0x22b   : > { %1315 = vtanh.f32 %v730_v32 }
 0x22c   : > { %1317 = vtanh.f32 %v749_v35 }
 0x22d   : > { %1319 = vtanh.f32 %v725_v31 }
 0x22e   : > { %1321 = vtanh.f32 %v744_v34 }
 0x22f   : > { %1323 = vtanh.f32 %v723_v36 }
 0x230   : > { %1325 = vtanh.f32 %v742_v37 }
 0x231   : > { %v1316_v40 = vpop.eup %1315 }
 0x232   : > { %v1318_v41 = vpop.eup %1317  ;;  %v778_v42 = vpack.c.bf16 %v1316_v40, %v1312_v38  ;;  %v930_v23 = vpop.permute.xlu1 %929 }
 0x233   : > { %v1320_v43 = vpop.eup %1319  ;;  %v779_v44 = vpack.c.bf16 %v1318_v41, %v1314_v39 }
 0x234   : > { %v1322_v45 = vpop.eup %1321  ;;  %860 = vmatpush.bf16.msrb.mxu2 %v778_v42 }
 0x235   : > { %v1324_v46 = vpop.eup %1323  ;;  %879 = vmatpush.bf16.msrb.mxu3 %v779_v44 }
 0x236   : > { %v1326_v48 = vpop.eup %1325  ;;  %v774_v49 = vpack.c.bf16 %v1320_v43, %v1324_v46 }
 0x237   : > { %v775_v50 = vpack.c.bf16 %v1322_v45, %v1326_v48  ;;  %1177 = vmatmul.msk.bf16.gmra.mxu0 %vm387_vm0, %v1202_v47 }
 0x238   : > { %861 = vmatpush.bf16.msrb.mxu2 %v774_v49  ;;  %1179 = vmatmul.msk.bf16.gmra.mxu1 %vm387_vm0, %v1202_v47 }
 0x239   : > { %880 = vmatpush.bf16.msrb.mxu3 %v775_v50 }
 0x23b   : > { %1180 = vmatmul.msk.bf16.vlgmr.msrb.gmra.mxu2 %vm387_vm0, %v1201_v28 }
 0x23c   : > { %1182 = vmatmul.msk.bf16.vlgmr.msrb.gmra.mxu3 %vm387_vm0, %v1201_v28 }
 0x24b   : > { %1181 = vmatmul.msk.bf16.gmra.mxu2 %vm387_vm0, %v1202_v47 }
 0x24c   : > { %1183 = vmatmul.msk.bf16.gmra.mxu3 %vm387_vm0, %v1202_v47 }
 0x2a4   : > { %v825_v51 = vpop.f32.mrf.mxu0 }
 0x2a5   : > { %v844_v52 = vpop.f32.mrf.mxu1  ;;  %v826_v6 = vadd.f32 %v825_v51, %v783_v55 }
 0x2a6   : > { %v845_v61 = vadd.f32 %v844_v52, %v783_v55 }
 0x2ac   : > { %v827_v53 = vpop.f32.mrf.mxu0 }
 0x2ad   : > { %v846_v54 = vpop.f32.mrf.mxu1  ;;  %v828_v5 = vadd.f32 %v827_v53, %v788_v57 }
 0x2ae   : > { %v847_v59 = vadd.f32 %v846_v54, %v788_v57 }
 0x2b0   : > { %1327 = vtanh.f32 %v847_v59 }
 0x2b1   : > { %1329 = vtanh.f32 %v845_v61 }
 0x2b4   : > { %v830_v58 = vpop.f32.mrf.mxu0 }
 0x2b5   : > { %v849_v56 = vpop.f32.mrf.mxu1  ;;  %v831_v8 = vadd.f32 %v830_v58, %v793_v60 }
 0x2b6   : > { %v850_v63 = vadd.f32 %v849_v56, %v793_v60  ;;  %v1328_v9 = vpop.eup %1327 }
 0x2b7   : > { %v1330_v12 = vpop.eup %1329  ;;  %v937_v16 = vmul.f32 %v1328_v9, %v920_v15 }
 0x2b8   : > { %1331 = vtanh.f32 %v850_v63  ;;  %v933_v19 = vmul.f32 %v1330_v12, %v1578_v4 }
 0x2ba   : > { %v957_v26 = vadd.f32 %v937_v16, %v933_v19 }
 0x2bc   : > { %v832_v7 = vpop.f32.mrf.mxu0 }
 0x2bd   : > { %v851_v1 = vpop.f32.mrf.mxu1  ;;  %v833_v10 = vadd.f32 %v832_v7, %v1575_v62 }
 0x2be   : > { %v863_v0 = vpop.f32.mrf.mxu2  ;;  %v852_v3 = vadd.f32 %v851_v1, %v1575_v62  ;;  %v1332_v14 = vpop.eup %1331 }
 0x2bf   : > { %v882_v2 = vpop.f32.mrf.mxu3  ;;  %v941_v20 = vmul.f32 %v1332_v14, %v925_v18  ;;  %v864_v21 = vadd.f32 %v863_v0, %v783_v55 }
 0x2c0   : > { %1333 = vtanh.f32 %v852_v3  ;;  %v883_v24 = vadd.f32 %v882_v2, %v783_v55 }
 0x2c1   : > { %1335 = vtanh.f32 %v828_v5  ;;  %v958_v33 = vadd.f32 %v957_v26, %v941_v20  ;;  %v988_v20 = vpop.permute.xlu2 %987 }
 0x2c2   : > { %1337 = vtanh.f32 %v826_v6  ;;  %v990_v26 = vperm.slane %v988_v20, 0 }
 0x2c3   : > { %1339 = vtanh.f32 %v831_v8 }
 0x2c4   : > { %1341 = vtanh.f32 %v833_v10 }
 0x2c5   : > { %1343 = vtanh.f32 %v864_v21 }
 0x2c6   : > { %v865_v11 = vpop.f32.mrf.mxu2  ;;  %v1334_v17 = vpop.eup %1333  ;;  %1345 = vtanh.f32 %v883_v24 }
 0x2c7   : > { %v884_v13 = vpop.f32.mrf.mxu3  ;;  %v1336_v22 = vpop.eup %1335  ;;  %v945_v27 = vmul.f32 %v1334_v17, %v930_v23  ;;  %v866_v28 = vadd.f32 %v865_v11, %v788_v57 }
 0x2c8   : > { %v1338_v25 = vpop.eup %1337  ;;  %v885_v30 = vadd.f32 %v884_v13, %v788_v57  ;;  %v936_v32 = vmul.f32 %v1336_v22, %v920_v15 }
 0x2c9   : > { %v1340_v29 = vpop.eup %1339  ;;  %v932_v38 = vmul.f32 %v1338_v25, %v1578_v4  ;;  %v959_v40 = vadd.f32 %v958_v33, %v945_v27  ;;  %1347 = vtanh.f32 %v866_v28 }
 0x2ca   : > { %v1342_v36 = vpop.eup %1341  ;;  %v940_v39 = vmul.f32 %v1340_v29, %v925_v18  ;;  %1349 = vtanh.f32 %v885_v30 }
 0x2cb   : > { %v948_v41 = vadd.f32 %v936_v32, %v932_v38  ;;  %v944_v42 = vmul.f32 %v1342_v36, %v930_v23  ;;  %v1344_v43 = vpop.eup %1343  ;;  %v960_v45 = vrot.slane %v959_v40, 4 }
 0x2cc   : > { %v1346_v46 = vpop.eup %1345 }
 0x2cd   : > { %v949_v44 = vadd.f32 %v948_v41, %v940_v39  ;;  %v961_v55 = vadd.f32 %v960_v45, %v959_v40  ;;  %v935_v0 = vmul.f32 %v1346_v46, %v1578_v4 }
 0x2ce   : > { %v868_v31 = vpop.f32.mrf.mxu2 }
 0x2cf   : > { %v869_v34 = vadd.f32 %v868_v31, %v793_v60  ;;  %v887_v35 = vpop.f32.mrf.mxu3  ;;  %v1348_v48 = vpop.eup %1347  ;;  %v950_v49 = vadd.f32 %v949_v44, %v944_v42  ;;  %v962_v63 = vrot.slane %v961_v55, 2 }
 0x2d0   : > { %v888_v37 = vadd.f32 %v887_v35, %v793_v60  ;;  %v1350_v52 = vpop.eup %1349  ;;  %v938_v57 = vmul.f32 %v1348_v48, %v920_v15  ;;  %v934_v60 = vmul.f32 %v1344_v43, %v1578_v4  ;;  %v1009_v35 = vlaneseq }
 0x2d1   : > { %1351 = vtanh.f32 %v869_v34  ;;  %v951_v58 = vrot.slane %v950_v49, 4  ;;  %v939_v59 = vmul.f32 %v1350_v52, %v920_v15  ;;  %v963_v9 = vadd.f32 %v962_v63, %v961_v55 }
 0x2d2   : > { %1353 = vtanh.f32 %v888_v37  ;;  %v966_v2 = vadd.f32 %v938_v57, %v934_v60  ;;  %vm1011_vm4 = vcmp.lt.s32.totalorder %v1009_v35, 512 }
 0x2d3   : > { %v952_v5 = vadd.f32 %v951_v58, %v950_v49  ;;  %v975_v6 = vadd.f32 %v939_v59, %v935_v0  ;;  %v964_v16 = vrot.slane %v963_v9, 1 }
 0x2d5   : > { %v953_v13 = vrot.slane %v952_v5, 2  ;;  %v965_v22 = vadd.f32 %v964_v16, %v963_v9 }
 0x2d6   : > { %v870_v47 = vpop.f32.mrf.mxu2 }
 0x2d7   : > { %v871_v50 = vadd.f32 %v870_v47, %v1575_v62  ;;  %v889_v51 = vpop.f32.mrf.mxu3  ;;  %v1352_v54 = vpop.eup %1351  ;;  %v954_v4 = vadd.f32 %v953_v13, %v952_v5  ;;  %v992_v29 = vadd.f32 %v990_v26, %v965_v22 }
 0x2d8   : > { %v890_v53 = vadd.f32 %v889_v51, %v1575_v62  ;;  %v1354_v56 = vpop.eup %1353  ;;  %v942_v61 = vmul.f32 %v1352_v54, %v925_v18 }
 0x2d9   : > { %1355 = vtanh.f32 %v871_v50  ;;  %v943_v1 = vmul.f32 %v1354_v56, %v925_v18  ;;  %v955_v27 = vrot.slane %v954_v4, 1  ;;  %v999_v36 = vrot.slane %v992_v29, 7 }
 0x2da   : > { %1357 = vtanh.f32 %v890_v53  ;;  %v967_v7 = vadd.f32 %v966_v2, %v942_v61 }
 0x2db   : > { %v976_v10 = vadd.f32 %v975_v6, %v943_v1  ;;  %v956_v32 = vadd.f32 %v955_v27, %v954_v4 }
 0x2dd   : > { %v991_v39 = vadd.f32 %v990_v26, %v956_v32 }
 0x2df   : > { %v1356_v3 = vpop.eup %1355  ;;  %v1003_v41 = vsel %vm1002_vm1, %v991_v39, %v999_v36 }
 0x2e0   : > { %v1358_v62 = vpop.eup %1357  ;;  %v946_v8 = vmul.f32 %v1356_v3, %v930_v23 }
 0x2e1   : > { %v947_v11 = vmul.f32 %v1358_v62, %v930_v23 }
 0x2e2   : > { %v968_v12 = vadd.f32 %v967_v7, %v946_v8 }
 0x2e3   : > { %v977_v14 = vadd.f32 %v976_v10, %v947_v11 }
 0x2e4   : > { %v969_v15 = vrot.slane %v968_v12, 4 }
 0x2e5   : > { %v978_v17 = vrot.slane %v977_v14, 4 }
 0x2e6   : > { %v970_v19 = vadd.f32 %v969_v15, %v968_v12 }
 0x2e7   : > { %v979_v18 = vadd.f32 %v978_v17, %v977_v14 }
 0x2e8   : > { %v971_v21 = vrot.slane %v970_v19, 2 }
 0x2e9   : > { %v980_v24 = vrot.slane %v979_v18, 2 }
 0x2ea   : > { %v972_v25 = vadd.f32 %v971_v21, %v970_v19 }
 0x2eb   : > { %v981_v28 = vadd.f32 %v980_v24, %v979_v18 }
 0x2ec   : > { %v973_v23 = vrot.slane %v972_v25, 1 }
 0x2ed   : > { %v982_v30 = vrot.slane %v981_v28, 1 }
 0x2ee   : > { %v974_v31 = vadd.f32 %v973_v23, %v972_v25 }
 0x2ef   : > { %v983_v33 = vadd.f32 %v982_v30, %v981_v28 }
 0x2f0   : > { %v993_v34 = vadd.f32 %v990_v26, %v974_v31 }
 0x2f1   : > { %v994_v37 = vadd.f32 %v990_v26, %v983_v33 }
 0x2f2   : > { %v1000_v38 = vrot.slane %v993_v34, 6 }
 0x2f3   : > { %v1001_v40 = vrot.slane %v994_v37, 5 }
 0x2f5   : > { %v1005_v42 = vsel %vm1004_vm2, %v1000_v38, %v1001_v40 }
 0x2f6   : > { %v1007_v43 = vsel %vm1006_vm3, %v1003_v41, %v1005_v42 }
 0x2f7   : > { %1013 = vst.msk [vmem:[%s286_s13] sm:$0xf] %vm1011_vm4, %v1007_v43 }
 0x2f8 PF: > { %p15_p9 = scmp.ge.s32.totalorder %s1439_s26, 4   ;;  %s1609_s23 = smov %s1377_s24 }
 0x2f9   : > { %s1610_s24 = smov %s1448_s29  ;;  %s1611_s25 = smov %s1439_s26 }
 0x2fa   :  { %17 = sbr.rel (!%p15_p9) target bundleno = 5 (0x5), region = 104 }

</bundles_post_ra>
